<compile_context>
chip_gen: v7x
topology: tpu7x:2x2x1
jax: 0.10.0
libtpu: 0.0.40
codegen_flags: <defaults>
</compile_context>

<pallas_src>
import functools

import jax
import jax.numpy as jnp
from jax.experimental import pallas as pl
from jax.experimental.pallas import tpu as pltpu


def _round_up(x, m):
    return ((x + m - 1) // m) * m


def _pseudo_count_kernel(x_ref, w1_ref, b1_ref, w2_ref, b2_ref,
                         w3t_ref, b3_ref, out_ref):
    """One batch tile of the MLP + density computation (all in VMEM).

    x_ref  : (TB, ob_dim)   bf16
    w1_ref : (ob_dim, size) bf16     b1_ref : (1, size) f32
    w2_ref : (size, size)   bf16     b2_ref : (1, size) f32
    w3t_ref: (1, size)      f32      b3_ref : (1, 1)    f32
    out_ref: (1, 1, TB)     f32   (lane-dense density row for this tile)
    """
    x = x_ref[...]                                                  # (TB, D) bf16

    # hidden layer 1: tanh(x @ W1 + b1)   (bf16 MXU, f32 accumulation)
    h = jnp.tanh(
        jnp.dot(x, w1_ref[...], preferred_element_type=jnp.float32)
        + b1_ref[...])                                              # (TB, S) f32

    # hidden layer 2: tanh(h @ W2 + b2)
    h = jnp.tanh(
        jnp.dot(h.astype(jnp.bfloat16), w2_ref[...],
                preferred_element_type=jnp.float32)
        + b2_ref[...])                                              # (TB, S) f32

    # output layer, lane-dense:  logit_row = w3^T . h^T  -> (1, TB)
    # (contract the feature axis of both operands; f32 operands so the
    #  transposed-RHS matmul lowers cleanly on all generations)
    logit = jax.lax.dot_general(
        w3t_ref[...], h,
        dimension_numbers=(((1,), (1,)), ((), ())),
        preferred_element_type=jnp.float32) + b3_ref[...]           # (1, TB)

    # density = (1 - sigmoid(z)) / sigmoid(z) == exp(-z)
    out_ref[0] = jnp.exp(-logit).astype(out_ref.dtype)


@functools.partial(jax.jit, static_argnames=("tile_b",))
def pseudo_count_forward(ob_no, params, *, tile_b=512):
    """PseudoCountModel.forward via a Pallas TPU kernel.

    ob_no:  (N, ob_dim) float array
    params: dict with w1 (ob_dim, size), b1 (1, size),
                      w2 (size, size),   b2 (1, size),
                      w3 (size, 1),      b3 (1, 1)
    returns density: (N, 1) float32
    """
    n, ob_dim = ob_no.shape
    size = params["w1"].shape[1]

    # Large batch tile (multiple of 128 -> dense output lanes, filled MXU
    # rows); clamp for small batches so padding stays bounded.
    tb = min(tile_b, _round_up(n, 128))
    n_pad = _round_up(n, tb)
    num_tiles = n_pad // tb

    # bf16 streaming inputs / MXU weights, f32 biases and accumulation.
    x = ob_no.astype(jnp.bfloat16)
    if n_pad != n:
        x = jnp.pad(x, ((0, n_pad - n), (0, 0)))
    w1 = params["w1"].astype(jnp.bfloat16)
    w2 = params["w2"].astype(jnp.bfloat16)
    b1 = params["b1"].astype(jnp.float32).reshape(1, size)
    b2 = params["b2"].astype(jnp.float32).reshape(1, size)
    w3t = params["w3"].astype(jnp.float32).reshape(1, size)   # (size,1) -> (1,size)
    b3 = params["b3"].astype(jnp.float32).reshape(1, 1)

    # Weights are tiny: replicate the full weight block at every grid step.
    rep = lambda shape: pl.BlockSpec(shape, lambda i, _s=shape: (0,) * len(_s))

    out = pl.pallas_call(
        _pseudo_count_kernel,
        out_shape=jax.ShapeDtypeStruct((num_tiles, 1, tb), jnp.float32),
        grid_spec=pltpu.PrefetchScalarGridSpec(
            num_scalar_prefetch=0,
            grid=(num_tiles,),
            in_specs=[
                pl.BlockSpec((tb, ob_dim), lambda i: (i, 0)),   # x batch tile
                rep((ob_dim, size)),                            # w1
                rep((1, size)),                                 # b1
                rep((size, size)),                              # w2
                rep((1, size)),                                 # b2
                rep((1, size)),                                 # w3^T
                rep((1, 1)),                                    # b3
            ],
            out_specs=pl.BlockSpec((1, 1, tb), lambda i: (i, 0, 0)),
        ),
        compiler_params=pltpu.CompilerParams(
            dimension_semantics=("parallel",)),   # batch tiles shard across TCs
    )(x, w1, b1, w2, b2, w3t, b3)

    # Rows of (num_tiles, 1, tb) are batch-contiguous: flatten, drop padding.
    return out.reshape(n_pad, 1)[:n]


def _init_params(key, ob_dim, size):
    """Deterministic synthetic parameters (build_mlp shapes, 2 hidden layers)."""
    ks = jax.random.split(key, 6)
    s1 = 1.0 / jnp.sqrt(ob_dim)
    s2 = 1.0 / jnp.sqrt(size)
    return {
        "w1": jax.random.normal(ks[0], (ob_dim, size), jnp.float32) * s1,
        "b1": jax.random.normal(ks[1], (1, size), jnp.float32) * 0.01,
        "w2": jax.random.normal(ks[2], (size, size), jnp.float32) * s2,
        "b2": jax.random.normal(ks[3], (1, size), jnp.float32) * 0.01,
        "w3": jax.random.normal(ks[4], (size, 1), jnp.float32) * s2,
        "b3": jax.random.normal(ks[5], (1, 1), jnp.float32) * 0.01,
    }


def _reference_forward(ob_no, params):
    """Pure-JAX reference mirroring the kernel's numerics (bf16 MXU inputs,
    f32 accumulation); algebraically identical to the PyTorch forward."""
    bf = jnp.bfloat16
    h = jnp.tanh(jnp.dot(ob_no.astype(bf), params["w1"].astype(bf),
                         preferred_element_type=jnp.float32) + params["b1"])
    h = jnp.tanh(jnp.dot(h.astype(bf), params["w2"].astype(bf),
                         preferred_element_type=jnp.float32) + params["b2"])
    logit = jnp.dot(h, params["w3"],
                    preferred_element_type=jnp.float32) + params["b3"]
    # (1 - sigmoid(z)) / sigmoid(z) == exp(-z)
    return jnp.exp(-logit)


# TODO(synk): update() (BCE training step, Adam optimizer, LR scheduler) is a
# training routine, not part of forward(); it is not implemented here.

if __name__ == "__main__":
    # ob_dim=32 features, 2 hidden layers of size 64; ragged batch of 1000
    # exercises the padding path and gives a 2-step parallel grid (tile 512).
    N, OB_DIM, SIZE = 1000, 32, 64

    key = jax.random.PRNGKey(0)
    k_x, k_p = jax.random.split(key)
    ob_no = jax.random.normal(k_x, (N, OB_DIM), jnp.float32)
    params = _init_params(k_p, OB_DIM, SIZE)

    density = pseudo_count_forward(ob_no, params, tile_b=512)
    density = jax.block_until_ready(density)

    ref = _reference_forward(ob_no, params)
    assert density.shape == (N, 1)
    assert bool(jnp.all(jnp.isfinite(density)))
    assert jnp.allclose(density, ref, rtol=5e-3, atol=1e-4), (
        f"max abs err {jnp.max(jnp.abs(density - ref))}")

    print("KERNEL_OK")
</pallas_src>

<mosaic_0001>
module attributes {stable_mosaic.version = 11 : i64} {
  func.func @_pseudo_count_kernel(%arg0: i32, %arg1: memref<512x32xbf16, #tpu.memory_space<vmem>>, %arg2: memref<32x64xbf16, #tpu.memory_space<vmem>>, %arg3: memref<1x64xf32, #tpu.memory_space<vmem>>, %arg4: memref<64x64xbf16, #tpu.memory_space<vmem>>, %arg5: memref<1x64xf32, #tpu.memory_space<vmem>>, %arg6: memref<1x64xf32, #tpu.memory_space<vmem>>, %arg7: memref<1x1xf32, #tpu.memory_space<vmem>>, %arg8: memref<1x1x512xf32, #tpu.memory_space<vmem>>) attributes {dimension_semantics = [#tpu.dimension_semantics<parallel>], iteration_bounds = array<i64: 2>, scalar_prefetch = 0 : i64, scratch_operands = 0 : i64, tpu.core_type = #tpu.core_type<tc>, window_params = [{transform_indices = @transform_0, window_bounds = array<i64: 512, 32>}, {pipeline_mode = #tpu.pipeline_mode<synchronous>, transform_indices = @transform_1, window_bounds = array<i64: 32, 64>}, {pipeline_mode = #tpu.pipeline_mode<synchronous>, transform_indices = @transform_2, window_bounds = array<i64: 1, 64>}, {pipeline_mode = #tpu.pipeline_mode<synchronous>, transform_indices = @transform_3, window_bounds = array<i64: 64, 64>}, {pipeline_mode = #tpu.pipeline_mode<synchronous>, transform_indices = @transform_4, window_bounds = array<i64: 1, 64>}, {pipeline_mode = #tpu.pipeline_mode<synchronous>, transform_indices = @transform_5, window_bounds = array<i64: 1, 64>}, {pipeline_mode = #tpu.pipeline_mode<synchronous>, transform_indices = @transform_6, window_bounds = array<i64: 1, 1>}, {transform_indices = @transform_7, window_bounds = array<i64: 1, 1, 512>}]} {
    %c0 = arith.constant 0 : index
    %c0_0 = arith.constant 0 : index
    %0 = vector.load %arg1[%c0, %c0_0] : memref<512x32xbf16, #tpu.memory_space<vmem>>, vector<512x32xbf16>
    %c0_1 = arith.constant 0 : index
    %c0_2 = arith.constant 0 : index
    %1 = vector.load %arg2[%c0_1, %c0_2] : memref<32x64xbf16, #tpu.memory_space<vmem>>, vector<32x64xbf16>
    %cst = arith.constant dense<0.000000e+00> : vector<512x64xf32>
    %2 = tpu.matmul %0, %1, %cst {dimension_numbers = #tpu.dot_dimension_numbers<[1], [0], [0], [1], [0, 0, 1, 1], [], []>} : vector<512x32xbf16>, vector<32x64xbf16>, vector<512x64xf32> -> vector<512x64xf32>
    %c0_3 = arith.constant 0 : index
    %c0_4 = arith.constant 0 : index
    %3 = vector.load %arg3[%c0_3, %c0_4] : memref<1x64xf32, #tpu.memory_space<vmem>>, vector<1x64xf32>
    %4 = vector.broadcast %3 : vector<1x64xf32> to vector<512x64xf32>
    %5 = arith.addf %2, %4 : vector<512x64xf32>
    %6 = math.tanh %5 : vector<512x64xf32>
    %7 = arith.truncf %6 : vector<512x64xf32> to vector<512x64xbf16>
    %c0_5 = arith.constant 0 : index
    %c0_6 = arith.constant 0 : index
    %8 = vector.load %arg4[%c0_5, %c0_6] : memref<64x64xbf16, #tpu.memory_space<vmem>>, vector<64x64xbf16>
    %cst_7 = arith.constant dense<0.000000e+00> : vector<512x64xf32>
    %9 = tpu.matmul %7, %8, %cst_7 {dimension_numbers = #tpu.dot_dimension_numbers<[1], [0], [0], [1], [0, 0, 1, 1], [], []>} : vector<512x64xbf16>, vector<64x64xbf16>, vector<512x64xf32> -> vector<512x64xf32>
    %c0_8 = arith.constant 0 : index
    %c0_9 = arith.constant 0 : index
    %10 = vector.load %arg5[%c0_8, %c0_9] : memref<1x64xf32, #tpu.memory_space<vmem>>, vector<1x64xf32>
    %11 = vector.broadcast %10 : vector<1x64xf32> to vector<512x64xf32>
    %12 = arith.addf %9, %11 : vector<512x64xf32>
    %13 = math.tanh %12 : vector<512x64xf32>
    %c0_10 = arith.constant 0 : index
    %c0_11 = arith.constant 0 : index
    %14 = vector.load %arg6[%c0_10, %c0_11] : memref<1x64xf32, #tpu.memory_space<vmem>>, vector<1x64xf32>
    %cst_12 = arith.constant dense<0.000000e+00> : vector<1x512xf32>
    %15 = tpu.matmul %14, %13, %cst_12 {dimension_numbers = #tpu.dot_dimension_numbers<[1], [1], [0], [0], [0, 0, 1, 0], [], []>} : vector<1x64xf32>, vector<512x64xf32>, vector<1x512xf32> -> vector<1x512xf32>
    %c0_13 = arith.constant 0 : index
    %c0_14 = arith.constant 0 : index
    %16 = vector.load %arg7[%c0_13, %c0_14] : memref<1x1xf32, #tpu.memory_space<vmem>>, vector<1x1xf32>
    %17 = vector.broadcast %16 : vector<1x1xf32> to vector<1x512xf32>
    %18 = arith.addf %15, %17 : vector<1x512xf32>
    %cst_15 = arith.constant 0.000000e+00 : f32
    %19 = vector.broadcast %cst_15 : f32 to vector<1x512xf32>
    %20 = arith.subf %19, %18 : vector<1x512xf32>
    %21 = math.exp %20 : vector<1x512xf32>
    %c0_16 = arith.constant 0 : index
    %c0_17 = arith.constant 0 : index
    %c0_18 = arith.constant 0 : index
    %22 = vector.load %arg8[%c0_16, %c0_17, %c0_18] : memref<1x1x512xf32, #tpu.memory_space<vmem>>, vector<1x1x512xf32>
    %23 = vector.shape_cast %22 : vector<1x1x512xf32> to vector<1x512xf32>
    %24 = vector.shape_cast %21 : vector<1x512xf32> to vector<1x1x512xf32>
    tpu.vector_store %arg8[%c0_16, %c0_17, %c0_18], %24 {strides = array<i32>} : memref<1x1x512xf32, #tpu.memory_space<vmem>>, vector<1x1x512xf32>,
    return
  }
  func.func @transform_0(%arg0: i32) -> (i32, i32) {
    %c0_i32 = arith.constant 0 : i32
    %c0_i32_0 = arith.constant 0 : i32
    return %arg0, %c0_i32 : i32, i32
  }
  func.func @transform_1(%arg0: i32) -> (i32, i32) {
    %c0_i32 = arith.constant 0 : i32
    %c0_i32_0 = arith.constant 0 : i32
    %c0_i32_1 = arith.constant 0 : i32
    return %c0_i32, %c0_i32_0 : i32, i32
  }
  func.func @transform_2(%arg0: i32) -> (i32, i32) {
    %c0_i32 = arith.constant 0 : i32
    %c0_i32_0 = arith.constant 0 : i32
    %c0_i32_1 = arith.constant 0 : i32
    return %c0_i32, %c0_i32_0 : i32, i32
  }
  func.func @transform_3(%arg0: i32) -> (i32, i32) {
    %c0_i32 = arith.constant 0 : i32
    %c0_i32_0 = arith.constant 0 : i32
    %c0_i32_1 = arith.constant 0 : i32
    return %c0_i32, %c0_i32_0 : i32, i32
  }
  func.func @transform_4(%arg0: i32) -> (i32, i32) {
    %c0_i32 = arith.constant 0 : i32
    %c0_i32_0 = arith.constant 0 : i32
    %c0_i32_1 = arith.constant 0 : i32
    return %c0_i32, %c0_i32_0 : i32, i32
  }
  func.func @transform_5(%arg0: i32) -> (i32, i32) {
    %c0_i32 = arith.constant 0 : i32
    %c0_i32_0 = arith.constant 0 : i32
    %c0_i32_1 = arith.constant 0 : i32
    return %c0_i32, %c0_i32_0 : i32, i32
  }
  func.func @transform_6(%arg0: i32) -> (i32, i32) {
    %c0_i32 = arith.constant 0 : i32
    %c0_i32_0 = arith.constant 0 : i32
    %c0_i32_1 = arith.constant 0 : i32
    return %c0_i32, %c0_i32_0 : i32, i32
  }
  func.func @transform_7(%arg0: i32) -> (i32, i32, i32) {
    %c0_i32 = arith.constant 0 : i32
    %c0_i32_0 = arith.constant 0 : i32
    %c0_i32_1 = arith.constant 0 : i32
    return %arg0, %c0_i32, %c0_i32_0 : i32, i32, i32
  }
}

</mosaic_0001>

<bundles_post_ra>
// kernel: pseudo_count_forward.1
= control target key start
LH: loop header
LB: loop body
LE: loop exit
PB: predicated region body
PF: predicated region fallthrough
CT: control target
= control target key end

     0   :  { %s3571_s0 = inlined_call_operand.vmem [shape: bf16[1024,32], index: 0, kind: input, shape index: {}]   ;;  %s3572_s1 = inlined_call_operand.vmem [shape: bf16[32,64], index: 1, kind: input, shape index: {}]   ;;  %s3573_s2 = inlined_call_operand.vmem [shape: f32[1,64], index: 2, kind: input, shape index: {}]   ;;  %s3574_s3 = inlined_call_operand.vmem [shape: bf16[64,64], index: 3, kind: input, shape index: {}]   ;;  %s3575_s4 = inlined_call_operand.vmem [shape: f32[1,64], index: 4, kind: input, shape index: {}]   ;;  %s3576_s5 = inlined_call_operand.vmem [shape: f32[1,64], index: 5, kind: input, shape index: {}]   ;;  %s3577_s6 = inlined_call_operand.<no memory space> [shape: f32[1,1], index: 6, kind: input, shape index: {}]   ;;  %s3578_s7 = inlined_call_operand.hbm [shape: f32[2,1,512], index: 7, kind: output, shape index: {}]  }
   0x1   :  { %v12_v0 = vstv %s3577_s6 }
   0x2   :  { %13 = vst [vmem:[#allocation2] sm:$0x1] %v12_v0 }
   0x3   :  { %14 = vsyncpa [#allocation4], 0 }
   0x4   :  { %16 = vsyncpa [#allocation4 + $0x1], 0  ;;  %s2979_s26 = smov 0   ;;  %s2981_s27 = smov 0  }
   0x5   :  { %s2983_s28 = smov 0   ;;  %s2985_s29 = smov 0  }
   0x6 LB: > { %s1967_s6 = sadd.s32 4294967295, %s2931_s29   ;;  %s1968_s30 = sadd.s32 4294967294, %s2931_s29   ;;  %s2931_s29 = sphi %s2985_s29, %s3586_s29   ;;  %s2927_s28 = sphi %s2983_s28, %s3585_s28   ;;  %s2923_s27 = sphi %s2981_s27, %s3584_s27   ;;  %s2919_s26 = sphi %s2979_s26, %s3583_s26  }
   0x7   : > { %s3002_s8 = sadd.s32 1, %s2931_s29   ;;  %s181_s9 = sadd.s32 1, %s2927_s28 }
   0x8   : > { %s178_s10 = ssub.s32 %s2931_s29, %s3002_s8  ;;  %p191_p0 = scmp.ne.s32.totalorder %s2927_s28, %s2923_s27 }
   0x9   : > { %p179_p1 = scmp.eq.s32.totalorder %s178_s10, 0  ;;  %p192_p2 = scmp.eq.s32.totalorder %s1967_s6, 1 }
   0xa   : > { %p197_p3 = scmp.ne.s32.totalorder %s2923_s27, %s2919_s26  ;;  %p198_p4 = scmp.eq.s32.totalorder %s1968_s30, 1 }
   0xb   : > { %s3012_s11 = scalar_select %p179_p1, %s2927_s28, %s181_s9  }
   0xc   : > { %p3014_p5 = por %p192_p2, %p191_p0  ;;  %p3018_p6 = por %p198_p4, %p197_p3 }
   0xd   : > { %p1971_p7 = scmp.ge.s32.totalorder %s2931_s29, 1  ;;  %p243_p8 = scmp.lt.s32.totalorder %s2931_s29, 3 }
   0xf   : > { %p244_p9 = pnand %p1971_p7, %p243_p8 }
  0x10   : > { %v2567_v1 = vld [vmem:[%s3572_s1] sm:$0xff] (!%p244_p9)   ;;  %s3027_s16 = sshll.u32 (!%p244_p9), %s1967_s6, 6  ;;  %v2568_v2 = vld [vmem:[%s3572_s1 + $0x8] sm:$0xff] (!%p244_p9)   ;;  %vm529_vm0 = vcmask (!%p244_p9), 261120   ;;  %v2603_v32 = vld [vmem:[%s3574_s3 + $0x10] sm:$0xff] (!%p244_p9)   ;;  %vm1050_vm1 = vcmask (!%p244_p9), 523264  }
  0x11   : > { %247 = sbr.rel (%p244_p9) target bundleno = 903 (0x387), region = 48  ;;  %p276_p10 = scmp.lt.s32.totalorder (!%p244_p9), %s3027_s16, 127  ;;  %2289 = vmatprep.subr.bf16.mxu0 (!%p244_p9), %v2567_v1  ;;  %v2601_v28 = vld [vmem:[%s3574_s3] sm:$0xff] (!%p244_p9)   ;;  %v2602_v29 = vld [vmem:[%s3574_s3 + $0x8] sm:$0xff] (!%p244_p9)   ;;  %v2604_v33 = vld [vmem:[%s3574_s3 + $0x18] sm:$0xff] (!%p244_p9)  }
  0x12   : > { %2290 = vmatpush3.bf16.msra.mxu0 (!%p244_p9), %v2567_v1  ;;  %2357 = vmatprep.subr.bf16.mxu1 (!%p244_p9), %v2601_v28  ;;  %v3118_v39 = vld [vmem:[%s3573_s2] ss:$0 sm:$0xff] (!%p244_p9)  ;;  %vm3304_vm2 = vmpackc.low (!%p244_p9), %vm1050_vm1, %vm1050_vm1  ;;  %s3529_s10 = scalar_lea.hbm (!%p244_p9), %s3578_s7, %s3027_s16  ;;  %s2935_s17 = smov (!%p244_p9), [#allocation3]  }
  0x13   : > { %2291 = vmatprep.subr.bf16.mxu0 (!%p244_p9), %v2568_v2  ;;  %2358 = vmatpush3.bf16.msra.mxu1 (!%p244_p9), %v2601_v28  ;;  %s2873_s18 = sshll.u32 (!%p244_p9), %s2935_s17, 4  ;;  %s2874_s18 = int_to_ptr.vmem [resolvable:$false] %s2873_s18 }
  0x14   : > { %2359 = vmatprep.subr.bf16.mxu1 (!%p244_p9), %v2602_v29 }
  0x16   : > { %2292 = vmatpush3.bf16.msra.mxu0 (!%p244_p9), %v2568_v2 }
  0x17   : > { %2360 = vmatpush3.bf16.msra.mxu1 (!%p244_p9), %v2602_v29 }
  0x18   : > { %s277_s19 = scalar_select %p276_p10, %s3027_s16, 127  ;;  %2361 = vmatprep.subr.bf16.mxu1 %v2603_v32 }
  0x1a   : > { %s1974_s20 = sshll.u32 %s277_s19, 2  ;;  %s2875_s19 = scalar_lea.vmem %s2874_s18, 128 }
  0x1b   : > { %s3037_s23 = scalar_lea.vmem %s3571_s0, %s1974_s20  ;;  %2362 = vmatpush3.bf16.msra.mxu1 %v2603_v32 }
  0x1c   : > { %v2569_v3 = vld [vmem:[%s3037_s23] sm:$0xff]   ;;  %v2570_v4 = vld [vmem:[%s3037_s23 + $0x8] sm:$0xff]   ;;  %v2571_v5 = vld [vmem:[%s3037_s23 + $0x10] sm:$0xff]   ;;  %2363 = vmatprep.subr.bf16.mxu1 %v2604_v33 }
  0x1d   : > { %2293 = vmatprep.mubr.msk.bf16.mxu0 %vm529_vm0, %v2569_v3  ;;  %v2572_v6 = vld [vmem:[%s3037_s23 + $0x18] sm:$0xff]   ;;  %v2573_v7 = vld [vmem:[%s3037_s23 + $0x20] sm:$0xff]   ;;  %v2574_v8 = vld [vmem:[%s3037_s23 + $0x28] sm:$0xff]  }
  0x1e   : > { %2294 = vmatmul.mubr.msk.bf16.vlgmr.msra.gmra.mrb[0].mxu0 %vm529_vm0, %v2570_v4  ;;  %v2575_v9 = vld [vmem:[%s3037_s23 + $0x30] sm:$0xff]   ;;  %v2576_v10 = vld [vmem:[%s3037_s23 + $0x38] sm:$0xff]   ;;  %v2577_v11 = vld [vmem:[%s3037_s23 + $0x40] sm:$0xff]  }
  0x1f   : > { %2297 = vmatprep.mubr.msk.bf16.mxu0 %vm529_vm0, %v2571_v5  ;;  %v2578_v12 = vld [vmem:[%s3037_s23 + $0x48] sm:$0xff]   ;;  %v2579_v13 = vld [vmem:[%s3037_s23 + $0x50] sm:$0xff]   ;;  %v2580_v14 = vld [vmem:[%s3037_s23 + $0x58] sm:$0xff]   ;;  %2364 = vmatpush3.bf16.msra.mxu1 %v2604_v33 }
  0x20   : > { %v2581_v15 = vld [vmem:[%s3037_s23 + $0x60] sm:$0xff]   ;;  %v2582_v16 = vld [vmem:[%s3037_s23 + $0x68] sm:$0xff]   ;;  %v2583_v17 = vld [vmem:[%s3037_s23 + $0x70] sm:$0xff]  }
  0x21   : > { %v2584_v18 = vld [vmem:[%s3037_s23 + $0x78] sm:$0xff]   ;;  %v2585_v19 = vld [vmem:[%s3037_s23 + $0x80] sm:$0xff]   ;;  %v2586_v20 = vld [vmem:[%s3037_s23 + $0x88] sm:$0xff]  }
  0x22   : > { %v2587_v21 = vld [vmem:[%s3037_s23 + $0x90] sm:$0xff]   ;;  %v2588_v22 = vld [vmem:[%s3037_s23 + $0x98] sm:$0xff]   ;;  %v2589_v23 = vld [vmem:[%s3037_s23 + $0xa0] sm:$0xff]  }
  0x23   : > { %v2590_v24 = vld [vmem:[%s3037_s23 + $0xa8] sm:$0xff]   ;;  %v2591_v25 = vld [vmem:[%s3037_s23 + $0xb0] sm:$0xff]   ;;  %v2592_v26 = vld [vmem:[%s3037_s23 + $0xb8] sm:$0xff]  }
  0x24   : > { %v2593_v27 = vld [vmem:[%s3037_s23 + $0xc0] sm:$0xff]   ;;  %v2594_v30 = vld [vmem:[%s3037_s23 + $0xc8] sm:$0xff]   ;;  %v2595_v31 = vld [vmem:[%s3037_s23 + $0xd0] sm:$0xff]  }
  0x25   : > { %v2596_v34 = vld [vmem:[%s3037_s23 + $0xd8] sm:$0xff]   ;;  %v2597_v35 = vld [vmem:[%s3037_s23 + $0xe0] sm:$0xff]   ;;  %v2598_v36 = vld [vmem:[%s3037_s23 + $0xe8] sm:$0xff]  }
  0x26   : > { %2298 = vmatmul.mubr.msk.bf16.gmra.mrb[4].mxu0 %vm529_vm0, %v2572_v6  ;;  %v2599_v37 = vld [vmem:[%s3037_s23 + $0xf0] sm:$0xff]   ;;  %v2600_v38 = vld [vmem:[%s3037_s23 + $0xf8] sm:$0xff]   ;;  %s272_s23 = sand.u32 1, %s2923_s27  }
  0x27   : > { %2301 = vmatprep.mubr.msk.bf16.mxu0 %vm529_vm0, %v2573_v7  ;;  %s1972_s24 = sshll.u32 %s272_s23, 2  ;;  %s1895_s14 = scalar_lea.sflag [#allocation4], %s272_s23 }
  0x28   : > { %s274_s25 = scalar_lea.vmem [#allocation3], %s1972_s24 }
  0x29   : > { %s1909_s6 = sshll.u32 %s274_s25, 4  ;;  %s3531_s6 = int_to_ptr.vmem [resolvable:$true] %s1909_s6 }
  0x2a   : > { %s2869_s15 = scalar_lea.vmem %s3531_s6, 64  ;;  %p2876_p0 = scmp.lt.s32.totalorder %s3531_s6, %s2874_s18 }
  0x2b   : > { %p2870_p11 = scmp.ne.s32.totalorder %s3531_s6, %s2869_s15  ;;  %p2877_p1 = scmp.lt.s32.totalorder %s2875_s19, %s2869_s15 }
  0x2d   : > { %p2871_p12 = pnand %p2870_p11, %p3014_p5  ;;  %p2878_p2 = por %p2877_p1, %p2876_p0 }
  0x2e   : > { %2302 = vmatmul.mubr.msk.bf16.gmra.mrb[8].mxu0 %vm529_vm0, %v2574_v8 }
  0x2f   : > { %2305 = vmatprep.mubr.msk.bf16.mxu0 %vm529_vm0, %v2575_v9  ;;  %p2872_p13 = pneg %p2871_p12 }
  0x31   : > { %p2879_p3 = pnand %p2878_p2, %p2872_p13 }
  0x36   : > { %2306 = vmatmul.mubr.msk.bf16.gmra.mrb[12].mxu0 %vm529_vm0, %v2576_v10 }
  0x37   : > { %2309 = vmatprep.mubr.msk.bf16.mxu0 %vm529_vm0, %v2577_v11 }
  0x3e   : > { %2310 = vmatmul.mubr.msk.bf16.gmra.mrb[16].mxu0 %vm529_vm0, %v2578_v12 }
  0x3f   : > { %2313 = vmatprep.mubr.msk.bf16.mxu0 %vm529_vm0, %v2579_v13 }
  0x46   : > { %2314 = vmatmul.mubr.msk.bf16.gmra.mrb[20].mxu0 %vm529_vm0, %v2580_v14 }
  0x47   : > { %2317 = vmatprep.mubr.msk.bf16.mxu0 %vm529_vm0, %v2581_v15 }
  0x4e   : > { %2318 = vmatmul.mubr.msk.bf16.gmra.mrb[24].mxu0 %vm529_vm0, %v2582_v16 }
  0x4f   : > { %2321 = vmatprep.mubr.msk.bf16.mxu0 %vm529_vm0, %v2583_v17 }
  0x56   : > { %2322 = vmatmul.mubr.msk.bf16.gmra.mrb[28].mxu0 %vm529_vm0, %v2584_v18 }
  0x57   : > { %2325 = vmatprep.mubr.msk.bf16.mxu0 %vm529_vm0, %v2585_v19 }
  0x5e   : > { %2326 = vmatmul.mubr.msk.bf16.gmra.mrb[32].mxu0 %vm529_vm0, %v2586_v20 }
  0x5f   : > { %2329 = vmatprep.mubr.msk.bf16.mxu0 %vm529_vm0, %v2587_v21 }
  0x66   : > { %2330 = vmatmul.mubr.msk.bf16.gmra.mrb[36].mxu0 %vm529_vm0, %v2588_v22 }
  0x67   : > { %2333 = vmatprep.mubr.msk.bf16.mxu0 %vm529_vm0, %v2589_v23 }
  0x6e   : > { %2334 = vmatmul.mubr.msk.bf16.gmra.mrb[40].mxu0 %vm529_vm0, %v2590_v24 }
  0x6f   : > { %2337 = vmatprep.mubr.msk.bf16.mxu0 %vm529_vm0, %v2591_v25 }
  0x76   : > { %2338 = vmatmul.mubr.msk.bf16.gmra.mrb[44].mxu0 %vm529_vm0, %v2592_v26 }
  0x77   : > { %2341 = vmatprep.mubr.msk.bf16.mxu0 %vm529_vm0, %v2593_v27 }
  0x7e   : > { %2342 = vmatmul.mubr.msk.bf16.gmra.mrb[48].mxu0 %vm529_vm0, %v2594_v30 }
  0x7f   : > { %2345 = vmatprep.mubr.msk.bf16.mxu0 %vm529_vm0, %v2595_v31 }
  0x86   : > { %2346 = vmatmul.mubr.msk.bf16.gmra.mrb[52].mxu0 %vm529_vm0, %v2596_v34 }
  0x87   : > { %2349 = vmatprep.mubr.msk.bf16.mxu0 %vm529_vm0, %v2597_v35 }
  0x8e   : > { %2350 = vmatmul.mubr.msk.bf16.gmra.mrb[56].mxu0 %vm529_vm0, %v2598_v36 }
  0x8f   : > { %2353 = vmatprep.mubr.msk.bf16.mxu0 %vm529_vm0, %v2599_v37 }
  0x96   : > { %2354 = vmatmul.mubr.msk.bf16.gmra.mrb[60].mxu0 %vm529_vm0, %v2600_v38 }
  0xf1   : > { %v2295_v40 = vpop.f32.mrb[0].mxu0 }
  0xf2   : > { %v669_v41 = vadd.f32 %v2295_v40, %v3118_v39  ;;  %v660_v42 = vpop.f32.mrb[1].mxu0 }
  0xf3   : > { %v661_v43 = vadd.f32 %v3118_v39, %v660_v42  ;;  %v2296_v44 = vpop.f32.mrb[2].mxu0 }
  0xf4   : > { %2605 = vtanh.f32 %v669_v41  ;;  %v672_v45 = vadd.f32 %v2296_v44, %v3118_v39  ;;  %v663_v46 = vpop.f32.mrb[3].mxu0 }
  0xf5   : > { %2607 = vtanh.f32 %v661_v43  ;;  %v664_v47 = vadd.f32 %v3118_v39, %v663_v46 }
  0xf6   : > { %2609 = vtanh.f32 %v672_v45 }
  0xf7   : > { %2611 = vtanh.f32 %v664_v47 }
  0xf9   : > { %v2299_v48 = vpop.f32.mrb[4].mxu0 }
  0xfa   : > { %v685_v49 = vadd.f32 %v2299_v48, %v3118_v39  ;;  %v676_v50 = vpop.f32.mrb[5].mxu0 }
  0xfb   : > { %v677_v51 = vadd.f32 %v3118_v39, %v676_v50  ;;  %v2300_v52 = vpop.f32.mrb[6].mxu0 }
  0xfc   : > { %2613 = vtanh.f32 %v685_v49  ;;  %v688_v53 = vadd.f32 %v2300_v52, %v3118_v39  ;;  %v679_v54 = vpop.f32.mrb[7].mxu0 }
  0xfd   : > { %2615 = vtanh.f32 %v677_v51  ;;  %v680_v55 = vadd.f32 %v3118_v39, %v679_v54 }
  0xfe   : > { %v2606_v56 = vpop.eup %2605  ;;  %2617 = vtanh.f32 %v688_v53 }
  0xff   : > { %v2608_v57 = vpop.eup %2607  ;;  %2619 = vtanh.f32 %v680_v55 }
 0x100   : > { %v2610_v58 = vpop.eup %2609 }
 0x101   : > { %v2612_v59 = vpop.eup %2611  ;;  %v2303_v60 = vpop.f32.mrb[8].mxu0  ;;  %v980_v61 = vpack.c.bf16 %v2610_v58, %v2606_v56 }
 0x102   : > { %v701_v62 = vadd.f32 %v2303_v60, %v3118_v39  ;;  %v692_v63 = vpop.f32.mrb[9].mxu0  ;;  %v979_v0 = vpack.c.bf16 %v2612_v59, %v2608_v57 }
 0x103   : > { %v693_v1 = vadd.f32 %v3118_v39, %v692_v63  ;;  %v2304_v2 = vpop.f32.mrb[10].mxu0 }
 0x104   : > { %2621 = vtanh.f32 %v701_v62  ;;  %v704_v3 = vadd.f32 %v2304_v2, %v3118_v39  ;;  %v695_v4 = vpop.f32.mrb[11].mxu0  ;;  %2365 = vmatprep.mubr.msk.bf16.mxu1 %vm1050_vm1, %v979_v0 }
 0x105   : > { %2623 = vtanh.f32 %v693_v1  ;;  %v696_v5 = vadd.f32 %v3118_v39, %v695_v4  ;;  %2366 = vmatmul.mubr.msk.bf16.vlgmr.msra.gmra.mrb[0].mxu1 %vm1050_vm1, %v980_v61 }
 0x106   : > { %v2614_v6 = vpop.eup %2613  ;;  %2625 = vtanh.f32 %v704_v3 }
 0x107   : > { %v2616_v7 = vpop.eup %2615  ;;  %2627 = vtanh.f32 %v696_v5 }
 0x108   : > { %v2618_v8 = vpop.eup %2617 }
 0x109   : > { %v2620_v9 = vpop.eup %2619  ;;  %v2307_v10 = vpop.f32.mrb[12].mxu0  ;;  %v982_v11 = vpack.c.bf16 %v2618_v8, %v2614_v6 }
 0x10a   : > { %v717_v12 = vadd.f32 %v2307_v10, %v3118_v39  ;;  %v708_v13 = vpop.f32.mrb[13].mxu0  ;;  %v981_v14 = vpack.c.bf16 %v2620_v9, %v2616_v7 }
 0x10b   : > { %v709_v15 = vadd.f32 %v3118_v39, %v708_v13  ;;  %v2308_v16 = vpop.f32.mrb[14].mxu0 }
 0x10c   : > { %2629 = vtanh.f32 %v717_v12  ;;  %v720_v17 = vadd.f32 %v2308_v16, %v3118_v39  ;;  %v711_v18 = vpop.f32.mrb[15].mxu0  ;;  %2369 = vmatprep.mubr.msk.bf16.mxu1 %vm1050_vm1, %v981_v14 }
 0x10d   : > { %2631 = vtanh.f32 %v709_v15  ;;  %v712_v19 = vadd.f32 %v3118_v39, %v711_v18  ;;  %2370 = vmatmul.mubr.msk.bf16.gmra.mrb[4].mxu1 %vm1050_vm1, %v982_v11 }
 0x10e   : > { %v2622_v20 = vpop.eup %2621  ;;  %2633 = vtanh.f32 %v720_v17 }
 0x10f   : > { %v2624_v21 = vpop.eup %2623  ;;  %2635 = vtanh.f32 %v712_v19 }
 0x110   : > { %v2626_v22 = vpop.eup %2625 }
 0x111   : > { %v2628_v23 = vpop.eup %2627  ;;  %v2311_v24 = vpop.f32.mrb[16].mxu0  ;;  %v984_v25 = vpack.c.bf16 %v2626_v22, %v2622_v20 }
 0x112   : > { %v733_v26 = vadd.f32 %v2311_v24, %v3118_v39  ;;  %v724_v27 = vpop.f32.mrb[17].mxu0  ;;  %v983_v28 = vpack.c.bf16 %v2628_v23, %v2624_v21 }
 0x113   : > { %v725_v29 = vadd.f32 %v3118_v39, %v724_v27  ;;  %v2312_v30 = vpop.f32.mrb[18].mxu0 }
 0x114   : > { %2637 = vtanh.f32 %v733_v26  ;;  %v736_v31 = vadd.f32 %v2312_v30, %v3118_v39  ;;  %v727_v32 = vpop.f32.mrb[19].mxu0  ;;  %2373 = vmatprep.mubr.msk.bf16.mxu1 %vm1050_vm1, %v983_v28 }
 0x115   : > { %2639 = vtanh.f32 %v725_v29  ;;  %v728_v33 = vadd.f32 %v3118_v39, %v727_v32  ;;  %2374 = vmatmul.mubr.msk.bf16.gmra.mrb[8].mxu1 %vm1050_vm1, %v984_v25 }
 0x116   : > { %v2630_v34 = vpop.eup %2629  ;;  %2641 = vtanh.f32 %v736_v31 }
 0x117   : > { %v2632_v35 = vpop.eup %2631  ;;  %2643 = vtanh.f32 %v728_v33 }
 0x118   : > { %v2634_v36 = vpop.eup %2633 }
 0x119   : > { %v2636_v37 = vpop.eup %2635  ;;  %v2315_v38 = vpop.f32.mrb[20].mxu0  ;;  %v986_v40 = vpack.c.bf16 %v2634_v36, %v2630_v34 }
 0x11a   : > { %v749_v41 = vadd.f32 %v2315_v38, %v3118_v39  ;;  %v740_v42 = vpop.f32.mrb[21].mxu0  ;;  %v985_v43 = vpack.c.bf16 %v2636_v37, %v2632_v35 }
 0x11b   : > { %v741_v44 = vadd.f32 %v3118_v39, %v740_v42  ;;  %v2316_v45 = vpop.f32.mrb[22].mxu0 }
 0x11c   : > { %2645 = vtanh.f32 %v749_v41  ;;  %v752_v46 = vadd.f32 %v2316_v45, %v3118_v39  ;;  %v743_v47 = vpop.f32.mrb[23].mxu0  ;;  %2377 = vmatprep.mubr.msk.bf16.mxu1 %vm1050_vm1, %v985_v43 }
 0x11d   : > { %2647 = vtanh.f32 %v741_v44  ;;  %v744_v48 = vadd.f32 %v3118_v39, %v743_v47  ;;  %2378 = vmatmul.mubr.msk.bf16.gmra.mrb[12].mxu1 %vm1050_vm1, %v986_v40 }
 0x11e   : > { %v2638_v49 = vpop.eup %2637  ;;  %2649 = vtanh.f32 %v752_v46 }
 0x11f   : > { %v2640_v50 = vpop.eup %2639  ;;  %2651 = vtanh.f32 %v744_v48 }
 0x120   : > { %v2642_v51 = vpop.eup %2641 }
 0x121   : > { %v2644_v52 = vpop.eup %2643  ;;  %v2319_v53 = vpop.f32.mrb[24].mxu0  ;;  %v988_v54 = vpack.c.bf16 %v2642_v51, %v2638_v49 }
 0x122   : > { %v765_v55 = vadd.f32 %v2319_v53, %v3118_v39  ;;  %v756_v56 = vpop.f32.mrb[25].mxu0  ;;  %v987_v57 = vpack.c.bf16 %v2644_v52, %v2640_v50 }
 0x123   : > { %v757_v58 = vadd.f32 %v3118_v39, %v756_v56  ;;  %v2320_v59 = vpop.f32.mrb[26].mxu0 }
 0x124   : > { %2653 = vtanh.f32 %v765_v55  ;;  %v768_v60 = vadd.f32 %v2320_v59, %v3118_v39  ;;  %v759_v61 = vpop.f32.mrb[27].mxu0  ;;  %2381 = vmatprep.mubr.msk.bf16.mxu1 %vm1050_vm1, %v987_v57 }
 0x125   : > { %2655 = vtanh.f32 %v757_v58  ;;  %v760_v62 = vadd.f32 %v3118_v39, %v759_v61  ;;  %2382 = vmatmul.mubr.msk.bf16.gmra.mrb[16].mxu1 %vm1050_vm1, %v988_v54 }
 0x126   : > { %v2646_v63 = vpop.eup %2645  ;;  %2657 = vtanh.f32 %v768_v60 }
 0x127   : > { %v2648_v0 = vpop.eup %2647  ;;  %2659 = vtanh.f32 %v760_v62 }
 0x128   : > { %v2650_v1 = vpop.eup %2649 }
 0x129   : > { %v2652_v2 = vpop.eup %2651  ;;  %v2323_v3 = vpop.f32.mrb[28].mxu0  ;;  %v990_v4 = vpack.c.bf16 %v2650_v1, %v2646_v63 }
 0x12a   : > { %v781_v5 = vadd.f32 %v2323_v3, %v3118_v39  ;;  %v772_v6 = vpop.f32.mrb[29].mxu0  ;;  %v989_v7 = vpack.c.bf16 %v2652_v2, %v2648_v0 }
 0x12b   : > { %v773_v8 = vadd.f32 %v3118_v39, %v772_v6  ;;  %v2324_v9 = vpop.f32.mrb[30].mxu0 }
 0x12c   : > { %2661 = vtanh.f32 %v781_v5  ;;  %v784_v10 = vadd.f32 %v2324_v9, %v3118_v39  ;;  %v775_v11 = vpop.f32.mrb[31].mxu0  ;;  %2385 = vmatprep.mubr.msk.bf16.mxu1 %vm1050_vm1, %v989_v7 }
 0x12d   : > { %2663 = vtanh.f32 %v773_v8  ;;  %v776_v12 = vadd.f32 %v3118_v39, %v775_v11  ;;  %2386 = vmatmul.mubr.msk.bf16.gmra.mrb[20].mxu1 %vm1050_vm1, %v990_v4 }
 0x12e   : > { %v2654_v13 = vpop.eup %2653  ;;  %2665 = vtanh.f32 %v784_v10 }
 0x12f   : > { %v2656_v14 = vpop.eup %2655  ;;  %2667 = vtanh.f32 %v776_v12 }
 0x130   : > { %v2658_v15 = vpop.eup %2657 }
 0x131   : > { %v2660_v16 = vpop.eup %2659  ;;  %v2327_v17 = vpop.f32.mrb[32].mxu0  ;;  %v992_v18 = vpack.c.bf16 %v2658_v15, %v2654_v13 }
 0x132   : > { %v797_v19 = vadd.f32 %v2327_v17, %v3118_v39  ;;  %v788_v20 = vpop.f32.mrb[33].mxu0  ;;  %v991_v21 = vpack.c.bf16 %v2660_v16, %v2656_v14 }
 0x133   : > { %v789_v22 = vadd.f32 %v3118_v39, %v788_v20  ;;  %v2328_v23 = vpop.f32.mrb[34].mxu0 }
 0x134   : > { %2669 = vtanh.f32 %v797_v19  ;;  %v800_v24 = vadd.f32 %v2328_v23, %v3118_v39  ;;  %v791_v25 = vpop.f32.mrb[35].mxu0  ;;  %2389 = vmatprep.mubr.msk.bf16.mxu1 %vm1050_vm1, %v991_v21 }
 0x135   : > { %2671 = vtanh.f32 %v789_v22  ;;  %v792_v26 = vadd.f32 %v3118_v39, %v791_v25  ;;  %2390 = vmatmul.mubr.msk.bf16.gmra.mrb[24].mxu1 %vm1050_vm1, %v992_v18 }
 0x136   : > { %v2662_v27 = vpop.eup %2661  ;;  %2673 = vtanh.f32 %v800_v24 }
 0x137   : > { %v2664_v28 = vpop.eup %2663  ;;  %2675 = vtanh.f32 %v792_v26 }
 0x138   : > { %v2666_v29 = vpop.eup %2665 }
 0x139   : > { %v2668_v30 = vpop.eup %2667  ;;  %v2331_v31 = vpop.f32.mrb[36].mxu0  ;;  %v994_v32 = vpack.c.bf16 %v2666_v29, %v2662_v27 }
 0x13a   : > { %v813_v33 = vadd.f32 %v2331_v31, %v3118_v39  ;;  %v804_v34 = vpop.f32.mrb[37].mxu0  ;;  %v993_v35 = vpack.c.bf16 %v2668_v30, %v2664_v28 }
 0x13b   : > { %v805_v36 = vadd.f32 %v3118_v39, %v804_v34  ;;  %v2332_v37 = vpop.f32.mrb[38].mxu0 }
 0x13c   : > { %2677 = vtanh.f32 %v813_v33  ;;  %v816_v38 = vadd.f32 %v2332_v37, %v3118_v39  ;;  %v807_v40 = vpop.f32.mrb[39].mxu0  ;;  %2393 = vmatprep.mubr.msk.bf16.mxu1 %vm1050_vm1, %v993_v35 }
 0x13d   : > { %2679 = vtanh.f32 %v805_v36  ;;  %v808_v41 = vadd.f32 %v3118_v39, %v807_v40  ;;  %2394 = vmatmul.mubr.msk.bf16.gmra.mrb[28].mxu1 %vm1050_vm1, %v994_v32 }
 0x13e   : > { %v2670_v42 = vpop.eup %2669  ;;  %2681 = vtanh.f32 %v816_v38 }
 0x13f   : > { %v2672_v43 = vpop.eup %2671  ;;  %2683 = vtanh.f32 %v808_v41 }
 0x140   : > { %v2674_v44 = vpop.eup %2673 }
 0x141   : > { %v2676_v45 = vpop.eup %2675  ;;  %v2335_v46 = vpop.f32.mrb[40].mxu0  ;;  %v996_v47 = vpack.c.bf16 %v2674_v44, %v2670_v42 }
 0x142   : > { %v829_v48 = vadd.f32 %v2335_v46, %v3118_v39  ;;  %v820_v49 = vpop.f32.mrb[41].mxu0  ;;  %v995_v50 = vpack.c.bf16 %v2676_v45, %v2672_v43 }
 0x143   : > { %v821_v51 = vadd.f32 %v3118_v39, %v820_v49  ;;  %v2336_v52 = vpop.f32.mrb[42].mxu0 }
 0x144   : > { %2685 = vtanh.f32 %v829_v48  ;;  %v832_v53 = vadd.f32 %v2336_v52, %v3118_v39  ;;  %v823_v54 = vpop.f32.mrb[43].mxu0  ;;  %2397 = vmatprep.mubr.msk.bf16.mxu1 %vm1050_vm1, %v995_v50 }
 0x145   : > { %2687 = vtanh.f32 %v821_v51  ;;  %v824_v55 = vadd.f32 %v3118_v39, %v823_v54  ;;  %2398 = vmatmul.mubr.msk.bf16.gmra.mrb[32].mxu1 %vm1050_vm1, %v996_v47 }
 0x146   : > { %v2678_v56 = vpop.eup %2677  ;;  %2689 = vtanh.f32 %v832_v53 }
 0x147   : > { %v2680_v57 = vpop.eup %2679  ;;  %2691 = vtanh.f32 %v824_v55 }
 0x148   : > { %v2682_v58 = vpop.eup %2681 }
 0x149   : > { %v2684_v59 = vpop.eup %2683  ;;  %v2339_v60 = vpop.f32.mrb[44].mxu0  ;;  %v998_v61 = vpack.c.bf16 %v2682_v58, %v2678_v56 }
 0x14a   : > { %v845_v62 = vadd.f32 %v2339_v60, %v3118_v39  ;;  %v836_v63 = vpop.f32.mrb[45].mxu0  ;;  %v997_v0 = vpack.c.bf16 %v2684_v59, %v2680_v57 }
 0x14b   : > { %v837_v1 = vadd.f32 %v3118_v39, %v836_v63  ;;  %v2340_v2 = vpop.f32.mrb[46].mxu0 }
 0x14c   : > { %2693 = vtanh.f32 %v845_v62  ;;  %v848_v3 = vadd.f32 %v2340_v2, %v3118_v39  ;;  %v839_v4 = vpop.f32.mrb[47].mxu0  ;;  %2401 = vmatprep.mubr.msk.bf16.mxu1 %vm1050_vm1, %v997_v0 }
 0x14d   : > { %2695 = vtanh.f32 %v837_v1  ;;  %v840_v5 = vadd.f32 %v3118_v39, %v839_v4  ;;  %2402 = vmatmul.mubr.msk.bf16.gmra.mrb[36].mxu1 %vm1050_vm1, %v998_v61 }
 0x14e   : > { %v2686_v6 = vpop.eup %2685  ;;  %2697 = vtanh.f32 %v848_v3 }
 0x14f   : > { %v2688_v7 = vpop.eup %2687  ;;  %2699 = vtanh.f32 %v840_v5 }
 0x150   : > { %v2690_v8 = vpop.eup %2689 }
 0x151   : > { %v2692_v9 = vpop.eup %2691  ;;  %v2343_v10 = vpop.f32.mrb[48].mxu0  ;;  %v1000_v11 = vpack.c.bf16 %v2690_v8, %v2686_v6 }
 0x152   : > { %v861_v12 = vadd.f32 %v2343_v10, %v3118_v39  ;;  %v852_v13 = vpop.f32.mrb[49].mxu0  ;;  %v999_v14 = vpack.c.bf16 %v2692_v9, %v2688_v7 }
 0x153   : > { %v853_v15 = vadd.f32 %v3118_v39, %v852_v13  ;;  %v2344_v16 = vpop.f32.mrb[50].mxu0 }
 0x154   : > { %2701 = vtanh.f32 %v861_v12  ;;  %v864_v17 = vadd.f32 %v2344_v16, %v3118_v39  ;;  %v855_v18 = vpop.f32.mrb[51].mxu0  ;;  %2405 = vmatprep.mubr.msk.bf16.mxu1 %vm1050_vm1, %v999_v14 }
 0x155   : > { %2703 = vtanh.f32 %v853_v15  ;;  %v856_v19 = vadd.f32 %v3118_v39, %v855_v18  ;;  %2406 = vmatmul.mubr.msk.bf16.gmra.mrb[40].mxu1 %vm1050_vm1, %v1000_v11 }
 0x156   : > { %v2694_v20 = vpop.eup %2693  ;;  %2705 = vtanh.f32 %v864_v17 }
 0x157   : > { %v2696_v21 = vpop.eup %2695  ;;  %2707 = vtanh.f32 %v856_v19 }
 0x158   : > { %v2698_v22 = vpop.eup %2697 }
 0x159   : > { %v2700_v23 = vpop.eup %2699  ;;  %v1002_v24 = vpack.c.bf16 %v2698_v22, %v2694_v20  ;;  %v2347_v25 = vpop.f32.mrb[52].mxu0 }
 0x15a   : > { %v1001_v26 = vpack.c.bf16 %v2700_v23, %v2696_v21  ;;  %v877_v27 = vadd.f32 %v2347_v25, %v3118_v39  ;;  %v868_v28 = vpop.f32.mrb[53].mxu0 }
 0x15b   : > { %v869_v29 = vadd.f32 %v3118_v39, %v868_v28  ;;  %v2348_v30 = vpop.f32.mrb[54].mxu0 }
 0x15c   : > { %2409 = vmatprep.mubr.msk.bf16.mxu1 %vm1050_vm1, %v1001_v26  ;;  %2709 = vtanh.f32 %v877_v27  ;;  %v880_v31 = vadd.f32 %v2348_v30, %v3118_v39  ;;  %v871_v32 = vpop.f32.mrb[55].mxu0 }
 0x15d   : > { %2410 = vmatmul.mubr.msk.bf16.gmra.mrb[44].mxu1 %vm1050_vm1, %v1002_v24  ;;  %2711 = vtanh.f32 %v869_v29  ;;  %v872_v33 = vadd.f32 %v3118_v39, %v871_v32 }
 0x15e   : > { %v2702_v34 = vpop.eup %2701  ;;  %2713 = vtanh.f32 %v880_v31 }
 0x15f   : > { %v2704_v35 = vpop.eup %2703  ;;  %2715 = vtanh.f32 %v872_v33 }
 0x160   : > { %v2706_v36 = vpop.eup %2705 }
 0x161   : > { %v2708_v37 = vpop.eup %2707  ;;  %v1004_v38 = vpack.c.bf16 %v2706_v36, %v2702_v34  ;;  %v2351_v40 = vpop.f32.mrb[56].mxu0 }
 0x162   : > { %v1003_v41 = vpack.c.bf16 %v2708_v37, %v2704_v35  ;;  %v893_v42 = vadd.f32 %v2351_v40, %v3118_v39  ;;  %v884_v43 = vpop.f32.mrb[57].mxu0 }
 0x163   : > { %v885_v44 = vadd.f32 %v3118_v39, %v884_v43  ;;  %v2352_v45 = vpop.f32.mrb[58].mxu0 }
 0x164   : > { %2413 = vmatprep.mubr.msk.bf16.mxu1 %vm1050_vm1, %v1003_v41  ;;  %2717 = vtanh.f32 %v893_v42  ;;  %v896_v46 = vadd.f32 %v2352_v45, %v3118_v39  ;;  %v887_v47 = vpop.f32.mrb[59].mxu0 }
 0x165   : > { %2414 = vmatmul.mubr.msk.bf16.gmra.mrb[48].mxu1 %vm1050_vm1, %v1004_v38  ;;  %2719 = vtanh.f32 %v885_v44  ;;  %v888_v48 = vadd.f32 %v3118_v39, %v887_v47 }
 0x166   : > { %v2710_v49 = vpop.eup %2709  ;;  %2721 = vtanh.f32 %v896_v46 }
 0x167   : > { %v2712_v50 = vpop.eup %2711  ;;  %2723 = vtanh.f32 %v888_v48 }
 0x168   : > { %v2714_v51 = vpop.eup %2713 }
 0x169   : > { %v2716_v52 = vpop.eup %2715  ;;  %v1006_v53 = vpack.c.bf16 %v2714_v51, %v2710_v49  ;;  %v2355_v54 = vpop.f32.mrb[60].mxu0 }
 0x16a   : > { %v1005_v55 = vpack.c.bf16 %v2716_v52, %v2712_v50  ;;  %v909_v56 = vadd.f32 %v2355_v54, %v3118_v39  ;;  %v900_v57 = vpop.f32.mrb[61].mxu0 }
 0x16b   : > { %v901_v58 = vadd.f32 %v3118_v39, %v900_v57  ;;  %v2356_v59 = vpop.f32.mrb[62].mxu0 }
 0x16c   : > { %2417 = vmatprep.mubr.msk.bf16.mxu1 %vm1050_vm1, %v1005_v55  ;;  %2725 = vtanh.f32 %v909_v56  ;;  %v912_v60 = vadd.f32 %v2356_v59, %v3118_v39  ;;  %v903_v61 = vpop.f32.mrb[63].mxu0 }
 0x16d   : > { %2418 = vmatmul.mubr.msk.bf16.gmra.mrb[52].mxu1 %vm1050_vm1, %v1006_v53  ;;  %2727 = vtanh.f32 %v901_v58  ;;  %v904_v62 = vadd.f32 %v3118_v39, %v903_v61  ;;  %v3219_v39 = vld [vmem:[%s3575_s4] ss:$0 sm:$0xff] }
 0x16e   : > { %v2718_v63 = vpop.eup %2717  ;;  %2729 = vtanh.f32 %v912_v60 }
 0x16f   : > { %v2720_v0 = vpop.eup %2719  ;;  %2731 = vtanh.f32 %v904_v62 }
 0x170   : > { %v2722_v1 = vpop.eup %2721 }
 0x171   : > { %v2724_v2 = vpop.eup %2723  ;;  %v1008_v3 = vpack.c.bf16 %v2722_v1, %v2718_v63 }
 0x172   : > { %v1007_v4 = vpack.c.bf16 %v2724_v2, %v2720_v0 }
 0x174   : > { %2421 = vmatprep.mubr.msk.bf16.mxu1 %vm1050_vm1, %v1007_v4 }
 0x175   : > { %2422 = vmatmul.mubr.msk.bf16.gmra.mrb[56].mxu1 %vm1050_vm1, %v1008_v3 }
 0x176   : > { %v2726_v5 = vpop.eup %2725 }
 0x177   : > { %v2728_v6 = vpop.eup %2727 }
 0x178   : > { %v2730_v7 = vpop.eup %2729 }
 0x179   : > { %v2732_v8 = vpop.eup %2731  ;;  %v1010_v9 = vpack.c.bf16 %v2730_v7, %v2726_v5 }
 0x17a   : > { %v1009_v10 = vpack.c.bf16 %v2732_v8, %v2728_v6 }
 0x17c   : > { %2425 = vmatprep.mubr.msk.bf16.mxu1 %vm1050_vm1, %v1009_v10 }
 0x17d   : > { %2426 = vmatmul.mubr.msk.bf16.gmra.mrb[60].mxu1 %vm1050_vm1, %v1010_v9 }
 0x1d8   : > { %v2367_v11 = vpop.f32.mrb[0].mxu1 }
 0x1d9   : > { %v1190_v12 = vadd.f32 %v2367_v11, %v3219_v39  ;;  %v1181_v13 = vpop.f32.mrb[1].mxu1 }
 0x1da   : > { %v1182_v14 = vadd.f32 %v3219_v39, %v1181_v13  ;;  %v2368_v15 = vpop.f32.mrb[2].mxu1 }
 0x1db   : > { %2733 = vtanh.f32 %v1190_v12  ;;  %v1193_v16 = vadd.f32 %v2368_v15, %v3219_v39  ;;  %v1184_v17 = vpop.f32.mrb[3].mxu1 }
 0x1dc   : > { %2735 = vtanh.f32 %v1182_v14  ;;  %v1185_v18 = vadd.f32 %v3219_v39, %v1184_v17 }
 0x1dd   : > { %2737 = vtanh.f32 %v1193_v16 }
 0x1de   : > { %2739 = vtanh.f32 %v1185_v18 }
 0x1e0   : > { %v2371_v19 = vpop.f32.mrb[4].mxu1 }
 0x1e1   : > { %v1206_v20 = vadd.f32 %v2371_v19, %v3219_v39  ;;  %v1197_v21 = vpop.f32.mrb[5].mxu1 }
 0x1e2   : > { %v1198_v22 = vadd.f32 %v3219_v39, %v1197_v21  ;;  %v2372_v23 = vpop.f32.mrb[6].mxu1 }
 0x1e3   : > { %2741 = vtanh.f32 %v1206_v20  ;;  %v1209_v24 = vadd.f32 %v2372_v23, %v3219_v39  ;;  %v1200_v25 = vpop.f32.mrb[7].mxu1  ;;  %v3296_v20 = vld [vmem:[%s3576_s5] sm:$0x1] }
 0x1e4   : > { %2743 = vtanh.f32 %v1198_v22  ;;  %v1201_v26 = vadd.f32 %v3219_v39, %v1200_v25  ;;  %2253 = vmatprep.mubr.msk.f32.mxu0 %vm1050_vm1, %v3296_v20  ;;  %2287 = vmatprep.mubr.msk.f32.mxu1 %vm1050_vm1, %v3296_v20 }
 0x1e5   : > { %v3229_v27 = vpop.eup %2733  ;;  %2745 = vtanh.f32 %v1209_v24 }
 0x1e6   : > { %v3231_v28 = vpop.eup %2735  ;;  %2747 = vtanh.f32 %v1201_v26 }
 0x1e7   : > { %v3233_v29 = vpop.eup %2737 }
 0x1e8   : > { %v3235_v30 = vpop.eup %2739  ;;  %v2375_v31 = vpop.f32.mrb[8].mxu1  ;;  %v2438_v32 = vpack.c.bf16 %v3233_v29, %v3229_v27 }
 0x1e9   : > { %v1222_v33 = vadd.f32 %v2375_v31, %v3219_v39  ;;  %v1213_v34 = vpop.f32.mrb[9].mxu1  ;;  %v2432_v35 = vpack.c.bf16 %v3235_v30, %v3231_v28 }
 0x1ea   : > { %v1214_v36 = vadd.f32 %v3219_v39, %v1213_v34  ;;  %v2376_v37 = vpop.f32.mrb[10].mxu1 }
 0x1eb   : > { %2749 = vtanh.f32 %v1222_v33  ;;  %v1225_v38 = vadd.f32 %v2376_v37, %v3219_v39  ;;  %v1216_v40 = vpop.f32.mrb[11].mxu1 }
 0x1ec   : > { %2751 = vtanh.f32 %v1214_v36  ;;  %v1217_v41 = vadd.f32 %v3219_v39, %v1216_v40 }
 0x1ed   : > { %v3245_v42 = vpop.eup %2741  ;;  %2753 = vtanh.f32 %v1225_v38 }
 0x1ee   : > { %v3247_v43 = vpop.eup %2743  ;;  %2755 = vtanh.f32 %v1217_v41 }
 0x1ef   : > { %v3249_v44 = vpop.eup %2745 }
 0x1f0   : > { %v3251_v45 = vpop.eup %2747  ;;  %v2379_v46 = vpop.f32.mrb[12].mxu1  ;;  %v2450_v47 = vpack.c.bf16 %v3249_v44, %v3245_v42 }
 0x1f1   : > { %v1238_v48 = vadd.f32 %v2379_v46, %v3219_v39  ;;  %v1229_v49 = vpop.f32.mrb[13].mxu1  ;;  %v2444_v50 = vpack.c.bf16 %v3251_v45, %v3247_v43  ;;  %v1501_v46 = vld [vmem:[#allocation2] sm:$0x1] }
 0x1f2   : > { %v1230_v51 = vadd.f32 %v3219_v39, %v1229_v49  ;;  %v2380_v52 = vpop.f32.mrb[14].mxu1  ;;  %v2933_v49 = vmov 0  }
 0x1f3   : > { %2757 = vtanh.f32 %v1238_v48  ;;  %v1241_v53 = vadd.f32 %v2380_v52, %v3219_v39  ;;  %v1232_v54 = vpop.f32.mrb[15].mxu1  ;;  %2566 = vset.pattern.permute.xlu0 %v2933_v49 }
 0x1f4   : > { %2759 = vtanh.f32 %v1230_v51  ;;  %v1233_v55 = vadd.f32 %v3219_v39, %v1232_v54  ;;  %1504 = vperm.xlu0 %2566, %v1501_v46  }
 0x1f5   : > { %v3261_v56 = vpop.eup %2749  ;;  %2761 = vtanh.f32 %v1241_v53 }
 0x1f6   : > { %v3263_v57 = vpop.eup %2751  ;;  %2763 = vtanh.f32 %v1233_v55 }
 0x1f7   : > { %v3265_v58 = vpop.eup %2753 }
 0x1f8   : > { %v3267_v59 = vpop.eup %2755  ;;  %v2383_v60 = vpop.f32.mrb[16].mxu1  ;;  %v2462_v61 = vpack.c.bf16 %v3265_v58, %v3261_v56 }
 0x1f9   : > { %v1254_v62 = vadd.f32 %v2383_v60, %v3219_v39  ;;  %v1245_v63 = vpop.f32.mrb[17].mxu1  ;;  %v2456_v0 = vpack.c.bf16 %v3267_v59, %v3263_v57 }
 0x1fa   : > { %v1246_v1 = vadd.f32 %v3219_v39, %v1245_v63  ;;  %v2384_v2 = vpop.f32.mrb[18].mxu1 }
 0x1fb   : > { %2765 = vtanh.f32 %v1254_v62  ;;  %v1257_v3 = vadd.f32 %v2384_v2, %v3219_v39  ;;  %v1248_v4 = vpop.f32.mrb[19].mxu1 }
 0x1fc   : > { %2767 = vtanh.f32 %v1246_v1  ;;  %v1249_v5 = vadd.f32 %v3219_v39, %v1248_v4 }
 0x1fd   : > { %v3277_v6 = vpop.eup %2757  ;;  %2769 = vtanh.f32 %v1257_v3 }
 0x1fe   : > { %v3279_v7 = vpop.eup %2759  ;;  %2771 = vtanh.f32 %v1249_v5 }
 0x1ff   : > { %v3281_v8 = vpop.eup %2761 }
 0x200   : > { %v3283_v9 = vpop.eup %2763  ;;  %v2387_v10 = vpop.f32.mrb[20].mxu1  ;;  %v2474_v11 = vpack.c.bf16 %v3281_v8, %v3277_v6 }
 0x201   : > { %v1270_v12 = vadd.f32 %v2387_v10, %v3219_v39  ;;  %v1261_v13 = vpop.f32.mrb[21].mxu1  ;;  %v2468_v14 = vpack.c.bf16 %v3283_v9, %v3279_v7 }
 0x202   : > { %v1262_v15 = vadd.f32 %v3219_v39, %v1261_v13  ;;  %v2388_v16 = vpop.f32.mrb[22].mxu1 }
 0x203   : > { %2773 = vtanh.f32 %v1270_v12  ;;  %v1273_v17 = vadd.f32 %v2388_v16, %v3219_v39  ;;  %v1264_v18 = vpop.f32.mrb[23].mxu1 }
 0x204   : > { %2775 = vtanh.f32 %v1262_v15  ;;  %v1265_v19 = vadd.f32 %v3219_v39, %v1264_v18 }
 0x205   : > { %v2766_v21 = vpop.eup %2765  ;;  %2777 = vtanh.f32 %v1273_v17 }
 0x206   : > { %v2768_v22 = vpop.eup %2767  ;;  %2779 = vtanh.f32 %v1265_v19 }
 0x207   : > { %v2770_v23 = vpop.eup %2769 }
 0x208   : > { %v2772_v24 = vpop.eup %2771  ;;  %v2391_v25 = vpop.f32.mrb[24].mxu1  ;;  %v2435_v31 = vpack.c.bf16 %v2770_v23, %v2766_v21 }
 0x209   : > { %v1286_v33 = vadd.f32 %v2391_v25, %v3219_v39  ;;  %v1277_v34 = vpop.f32.mrb[25].mxu1  ;;  %v2429_v36 = vpack.c.bf16 %v2772_v24, %v2768_v22 }
 0x20a   : > { %v1278_v37 = vadd.f32 %v3219_v39, %v1277_v34  ;;  %v2392_v38 = vpop.f32.mrb[26].mxu1 }
 0x20b   : > { %2781 = vtanh.f32 %v1286_v33  ;;  %v1289_v40 = vadd.f32 %v2392_v38, %v3219_v39  ;;  %v1280_v41 = vpop.f32.mrb[27].mxu1  ;;  %2431 = vmatprep.subr.msk.bf16.mxu0 %vm3304_vm2, %v2429_v36 }
 0x20c   : > { %2783 = vtanh.f32 %v1278_v37  ;;  %v1281_v48 = vadd.f32 %v3219_v39, %v1280_v41  ;;  %2434 = vmatpush3.bf16.xpose.msk.msra.mxu0 %vm3304_vm2, %v2432_v35 }
 0x20d   : > { %v2774_v51 = vpop.eup %2773  ;;  %2785 = vtanh.f32 %v1289_v40  ;;  %2437 = vmatprep.subr.msk.bf16.mxu0 %vm3304_vm2, %v2435_v31 }
 0x20e   : > { %v2776_v52 = vpop.eup %2775  ;;  %2787 = vtanh.f32 %v1281_v48 }
 0x20f   : > { %v2778_v53 = vpop.eup %2777 }
 0x210   : > { %v2780_v54 = vpop.eup %2779  ;;  %v2395_v55 = vpop.f32.mrb[28].mxu1  ;;  %v2447_v60 = vpack.c.bf16 %v2778_v53, %v2774_v51 }
 0x211   : > { %v1302_v62 = vadd.f32 %v2395_v55, %v3219_v39  ;;  %v1293_v28 = vpop.f32.mrb[29].mxu1  ;;  %v2441_v30 = vpack.c.bf16 %v2780_v54, %v2776_v52 }
 0x212   : > { %v1294_v35 = vadd.f32 %v3219_v39, %v1293_v28  ;;  %v2396_v63 = vpop.f32.mrb[30].mxu1 }
 0x213   : > { %2789 = vtanh.f32 %v1302_v62  ;;  %v1305_v1 = vadd.f32 %v2396_v63, %v3219_v39  ;;  %v1296_v2 = vpop.f32.mrb[31].mxu1 }
 0x214   : > { %2791 = vtanh.f32 %v1294_v35  ;;  %v1297_v3 = vadd.f32 %v3219_v39, %v1296_v2  ;;  %2440 = vmatpush3.bf16.xpose.msk.msra.mxu0 %vm3304_vm2, %v2438_v32 }
 0x215   : > { %v3330_v4 = vpop.eup %2781  ;;  %2793 = vtanh.f32 %v1305_v1  ;;  %2443 = vmatprep.subr.msk.bf16.mxu0 %vm3304_vm2, %v2441_v30 }
 0x216   : > { %v2784_v5 = vpop.eup %2783  ;;  %2795 = vtanh.f32 %v1297_v3 }
 0x217   : > { %v2786_v10 = vpop.eup %2785 }
 0x218   : > { %v2788_v12 = vpop.eup %2787  ;;  %v2399_v13 = vpop.f32.mrb[32].mxu1  ;;  %v2459_v15 = vpack.c.bf16 %v2786_v10, %v3330_v4 }
 0x219   : > { %v1318_v16 = vadd.f32 %v2399_v13, %v3219_v39  ;;  %v1309_v17 = vpop.f32.mrb[33].mxu1  ;;  %v2453_v27 = vpack.c.bf16 %v2788_v12, %v2784_v5 }
 0x21a   : > { %v1310_v29 = vadd.f32 %v3219_v39, %v1309_v17  ;;  %v2400_v32 = vpop.f32.mrb[34].mxu1 }
 0x21b   : > { %2797 = vtanh.f32 %v1318_v16  ;;  %v1321_v18 = vadd.f32 %v2400_v32, %v3219_v39  ;;  %v1312_v19 = vpop.f32.mrb[35].mxu1 }
 0x21c   : > { %2799 = vtanh.f32 %v1310_v29  ;;  %v1313_v21 = vadd.f32 %v3219_v39, %v1312_v19  ;;  %2446 = vmatpush3.bf16.xpose.msk.msra.mxu0 %vm3304_vm2, %v2444_v50 }
 0x21d   : > { %v3344_v22 = vpop.eup %2789  ;;  %2801 = vtanh.f32 %v1321_v18  ;;  %2449 = vmatprep.subr.msk.bf16.mxu0 %vm3304_vm2, %v2447_v60 }
 0x21e   : > { %v2792_v23 = vpop.eup %2791  ;;  %2803 = vtanh.f32 %v1313_v21 }
 0x21f   : > { %v3348_v24 = vpop.eup %2793 }
 0x220   : > { %v2796_v25 = vpop.eup %2795  ;;  %v2403_v31 = vpop.f32.mrb[36].mxu1  ;;  %v2471_v33 = vpack.c.bf16 %v3348_v24, %v3344_v22 }
 0x221   : > { %v1334_v43 = vadd.f32 %v2403_v31, %v3219_v39  ;;  %v1325_v45 = vpop.f32.mrb[37].mxu1  ;;  %v2465_v34 = vpack.c.bf16 %v2796_v25, %v2792_v23 }
 0x222   : > { %v1326_v50 = vadd.f32 %v3219_v39, %v1325_v45  ;;  %v2404_v36 = vpop.f32.mrb[38].mxu1 }
 0x223   : > { %2805 = vtanh.f32 %v1334_v43  ;;  %v1337_v37 = vadd.f32 %v2404_v36, %v3219_v39  ;;  %v1328_v38 = vpop.f32.mrb[39].mxu1 }
 0x224   : > { %2807 = vtanh.f32 %v1326_v50  ;;  %v1329_v40 = vadd.f32 %v3219_v39, %v1328_v38  ;;  %2452 = vmatpush3.bf16.xpose.msk.msra.mxu0 %vm3304_vm2, %v2450_v47 }
 0x225   : > { %v3361_v41 = vpop.eup %2797  ;;  %2809 = vtanh.f32 %v1337_v37  ;;  %2455 = vmatprep.subr.msk.bf16.mxu0 %vm3304_vm2, %v2453_v27 }
 0x226   : > { %v3365_v46 = vpop.eup %2799  ;;  %2811 = vtanh.f32 %v1329_v40 }
 0x227   : > { %v3367_v48 = vpop.eup %2801 }
 0x228   : > { %v3369_v49 = vpop.eup %2803  ;;  %v2407_v51 = vpop.f32.mrb[40].mxu1  ;;  %v2486_v42 = vpack.c.bf16 %v3367_v48, %v3361_v41 }
 0x229   : > { %v1350_v44 = vadd.f32 %v2407_v51, %v3219_v39  ;;  %v1341_v47 = vpop.f32.mrb[41].mxu1  ;;  %v2480_v52 = vpack.c.bf16 %v3369_v49, %v3365_v46 }
 0x22a   : > { %v1342_v53 = vadd.f32 %v3219_v39, %v1341_v47  ;;  %v2408_v54 = vpop.f32.mrb[42].mxu1 }
 0x22b   : > { %2813 = vtanh.f32 %v1350_v44  ;;  %v1353_v55 = vadd.f32 %v2408_v54, %v3219_v39  ;;  %v1344_v60 = vpop.f32.mrb[43].mxu1 }
 0x22c   : > { %2815 = vtanh.f32 %v1342_v53  ;;  %v1345_v62 = vadd.f32 %v3219_v39, %v1344_v60  ;;  %2458 = vmatpush3.bf16.xpose.msk.msra.mxu0 %vm3304_vm2, %v2456_v0 }
 0x22d   : > { %v3384_v28 = vpop.eup %2805  ;;  %2817 = vtanh.f32 %v1353_v55  ;;  %2461 = vmatprep.subr.msk.bf16.mxu0 %vm3304_vm2, %v2459_v15 }
 0x22e   : > { %v3388_v30 = vpop.eup %2807  ;;  %2819 = vtanh.f32 %v1345_v62 }
 0x22f   : > { %v3390_v35 = vpop.eup %2809 }
 0x230   : > { %v3392_v63 = vpop.eup %2811  ;;  %v2411_v1 = vpop.f32.mrb[44].mxu1  ;;  %v2498_v57 = vpack.c.bf16 %v3390_v35, %v3384_v28  ;;  %v1507_v28 = vlaneseq }
 0x231   : > { %v1366_v59 = vadd.f32 %v2411_v1, %v3219_v39  ;;  %v1357_v0 = vpop.f32.mrb[45].mxu1  ;;  %v2492_v2 = vpack.c.bf16 %v3392_v63, %v3388_v30 }
 0x232   : > { %v1358_v3 = vadd.f32 %v3219_v39, %v1357_v0  ;;  %v2412_v4 = vpop.f32.mrb[46].mxu1  ;;  %v1508_v30 = vshrl.u32 %v1507_v28, 7  ;;  %vm1891_vm3 = vcmp.lt.s32.totalorder %v1507_v28, 512 }
 0x233   : > { %2821 = vtanh.f32 %v1366_v59  ;;  %v1369_v5 = vadd.f32 %v2412_v4, %v3219_v39  ;;  %v1360_v10 = vpop.f32.mrb[47].mxu1 }
 0x234   : > { %2823 = vtanh.f32 %v1358_v3  ;;  %v1361_v12 = vadd.f32 %v3219_v39, %v1360_v10  ;;  %2464 = vmatpush3.bf16.xpose.msk.msra.mxu0 %vm3304_vm2, %v2462_v61  ;;  %v1509_v35 = vsub.s32 0, %v1508_v30 }
 0x235   : > { %v3407_v13 = vpop.eup %2813  ;;  %2825 = vtanh.f32 %v1369_v5  ;;  %2467 = vmatprep.subr.msk.bf16.mxu0 %vm3304_vm2, %v2465_v34 }
 0x236   : > { %v3411_v15 = vpop.eup %2815  ;;  %2827 = vtanh.f32 %v1361_v12 }
 0x237   : > { %v3413_v16 = vpop.eup %2817 }
 0x238   : > { %v3415_v17 = vpop.eup %2819  ;;  %v2415_v27 = vpop.f32.mrb[48].mxu1  ;;  %v2510_v56 = vpack.c.bf16 %v3413_v16, %v3407_v13 }
 0x239   : > { %v1382_v58 = vadd.f32 %v2415_v27, %v3219_v39  ;;  %v1373_v61 = vpop.f32.mrb[49].mxu1  ;;  %v2504_v29 = vpack.c.bf16 %v3415_v17, %v3411_v15 }
 0x23a   : > { %v1374_v32 = vadd.f32 %v3219_v39, %v1373_v61  ;;  %v2416_v18 = vpop.f32.mrb[50].mxu1 }
 0x23b   : > { %2829 = vtanh.f32 %v1382_v58  ;;  %v1385_v19 = vadd.f32 %v2416_v18, %v3219_v39  ;;  %v1376_v21 = vpop.f32.mrb[51].mxu1 }
 0x23c   : > { %2831 = vtanh.f32 %v1374_v32  ;;  %v1377_v23 = vadd.f32 %v3219_v39, %v1376_v21  ;;  %2470 = vmatpush3.bf16.xpose.msk.msra.mxu0 %vm3304_vm2, %v2468_v14 }
 0x23d   : > { %v3430_v25 = vpop.eup %2821  ;;  %2833 = vtanh.f32 %v1385_v19  ;;  %2473 = vmatprep.subr.msk.bf16.mxu0 %vm3304_vm2, %v2471_v33 }
 0x23e   : > { %v3437_v31 = vpop.eup %2823  ;;  %2835 = vtanh.f32 %v1377_v23 }
 0x23f   : > { %v3439_v43 = vpop.eup %2825 }
 0x240   : > { %v3441_v45 = vpop.eup %2827  ;;  %v2419_v7 = vpop.f32.mrb[52].mxu1  ;;  %v2522_v9 = vpack.c.bf16 %v3439_v43, %v3430_v25 }
 0x241   : > { %v1398_v14 = vadd.f32 %v2419_v7, %v3219_v39  ;;  %v1389_v34 = vpop.f32.mrb[53].mxu1  ;;  %v2516_v22 = vpack.c.bf16 %v3441_v45, %v3437_v31 }
 0x242   : > { %v1390_v24 = vadd.f32 %v3219_v39, %v1389_v34  ;;  %v2420_v33 = vpop.f32.mrb[54].mxu1 }
 0x243   : > { %2837 = vtanh.f32 %v1398_v14  ;;  %v1401_v50 = vadd.f32 %v2420_v33, %v3219_v39  ;;  %v1392_v36 = vpop.f32.mrb[55].mxu1 }
 0x244   : > { %2476 = vmatpush3.bf16.xpose.msk.msra.mxu0 %vm3304_vm2, %v2474_v11  ;;  %2839 = vtanh.f32 %v1390_v24  ;;  %v1393_v37 = vadd.f32 %v3219_v39, %v1392_v36 }
 0x245   : > { %v2830_v38 = vpop.eup %2829  ;;  %2841 = vtanh.f32 %v1401_v50 }
 0x246   : > { %v2832_v40 = vpop.eup %2831  ;;  %2843 = vtanh.f32 %v1393_v37 }
 0x247   : > { %v2834_v51 = vpop.eup %2833 }
 0x248   : > { %v2836_v44 = vpop.eup %2835  ;;  %v2483_v47 = vpack.c.bf16 %v2834_v51, %v2830_v38  ;;  %v2423_v53 = vpop.f32.mrb[56].mxu1  ;;  %v2934_v38 = vmov 1966171168  }
 0x249   : > { %v2477_v54 = vpack.c.bf16 %v2836_v44, %v2832_v40  ;;  %v1414_v55 = vadd.f32 %v2423_v53, %v3219_v39  ;;  %v1405_v60 = vpop.f32.mrb[57].mxu1  ;;  %v1867_v40 = vunpack.c.l.s4 %v2934_v38 }
 0x24a   : > { %v1406_v6 = vadd.f32 %v3219_v39, %v1405_v60  ;;  %v2424_v8 = vpop.f32.mrb[58].mxu1 }
 0x24b   : > { %2479 = vmatprep.subr.msk.bf16.mxu1 %vm3304_vm2, %v2477_v54  ;;  %2845 = vtanh.f32 %v1414_v55  ;;  %v1417_v11 = vadd.f32 %v2424_v8, %v3219_v39  ;;  %v1408_v62 = vpop.f32.mrb[59].mxu1  ;;  %2254 = vmatmul.mubr.msk.f32.vlgmr.msra.gmra.mrb[64].mxu0 %vm1050_vm1, %v3296_v20  ;;  %v1868_v51 = vunpack.c.0.s8 %v1867_v40 }
 0x24c   : > { %2482 = vmatpush3.bf16.xpose.msk.msra.mxu1 %vm3304_vm2, %v2480_v52  ;;  %2847 = vtanh.f32 %v1406_v6  ;;  %v1409_v1 = vadd.f32 %v3219_v39, %v1408_v62 }
 0x24d   : > { %v2838_v59 = vpop.eup %2837  ;;  %2485 = vmatprep.subr.msk.bf16.mxu1 %vm3304_vm2, %v2483_v47  ;;  %2849 = vtanh.f32 %v1417_v11  ;;  %v1871_v44 = vsub.s32 %v1868_v51, %v1508_v30 }
 0x24e   : > { %v2840_v0 = vpop.eup %2839  ;;  %2851 = vtanh.f32 %v1409_v1 }
 0x24f   : > { %v2842_v3 = vpop.eup %2841 }
 0x250   : > { %v2844_v4 = vpop.eup %2843  ;;  %v2495_v5 = vpack.c.bf16 %v2842_v3, %v2838_v59  ;;  %v2427_v10 = vpop.f32.mrb[60].mxu1 }
 0x251   : > { %v2489_v12 = vpack.c.bf16 %v2844_v4, %v2840_v0  ;;  %v1430_v46 = vadd.f32 %v2427_v10, %v3219_v39  ;;  %v1421_v49 = vpop.f32.mrb[61].mxu1 }
 0x252   : > { %v1422_v52 = vadd.f32 %v3219_v39, %v1421_v49  ;;  %v2428_v27 = vpop.f32.mrb[62].mxu1 }
 0x253   : > { %2853 = vtanh.f32 %v1430_v46  ;;  %v1433_v58 = vadd.f32 %v2428_v27, %v3219_v39  ;;  %v1424_v61 = vpop.f32.mrb[63].mxu1 }
 0x254   : > { %2488 = vmatpush3.bf16.xpose.msk.msra.mxu1 %vm3304_vm2, %v2486_v42  ;;  %2855 = vtanh.f32 %v1422_v52  ;;  %v1425_v32 = vadd.f32 %v3219_v39, %v1424_v61 }
 0x255   : > { %v2846_v18 = vpop.eup %2845  ;;  %2491 = vmatprep.subr.msk.bf16.mxu1 %vm3304_vm2, %v2489_v12  ;;  %2857 = vtanh.f32 %v1433_v58 }
 0x256   : > { %v2848_v19 = vpop.eup %2847  ;;  %2859 = vtanh.f32 %v1425_v32 }
 0x257   : > { %v2850_v21 = vpop.eup %2849 }
 0x258   : > { %v2852_v23 = vpop.eup %2851  ;;  %v2507_v7 = vpack.c.bf16 %v2850_v21, %v2846_v18 }
 0x259   : > { %v2501_v14 = vpack.c.bf16 %v2852_v23, %v2848_v19 }
 0x25c   : > { %2494 = vmatpush3.bf16.xpose.msk.msra.mxu1 %vm3304_vm2, %v2492_v2 }
 0x25d   : > { %v2854_v41 = vpop.eup %2853  ;;  %2497 = vmatprep.subr.msk.bf16.mxu1 %vm3304_vm2, %v2495_v5 }
 0x25e   : > { %v2856_v39 = vpop.eup %2855 }
 0x25f   : > { %v2858_v48 = vpop.eup %2857 }
 0x260   : > { %v2860_v42 = vpop.eup %2859  ;;  %v2519_v34 = vpack.c.bf16 %v2858_v48, %v2854_v41 }
 0x261   : > { %v2513_v24 = vpack.c.bf16 %v2860_v42, %v2856_v39 }
 0x264   : > { %2500 = vmatpush3.bf16.xpose.msk.msra.mxu1 %vm3304_vm2, %v2498_v57 }
 0x265   : > { %2503 = vmatprep.subr.msk.bf16.mxu1 %vm3304_vm2, %v2501_v14 }
 0x26c   : > { %2506 = vmatpush3.bf16.xpose.msk.msra.mxu1 %vm3304_vm2, %v2504_v29 }
 0x26d   : > { %2509 = vmatprep.subr.msk.bf16.mxu1 %vm3304_vm2, %v2507_v7 }
 0x273   : > { %v1505_v63 = vpop.permute.xlu0 %1504 }
 0x274   : > { %2512 = vmatpush3.bf16.xpose.msk.msra.mxu1 %vm3304_vm2, %v2510_v56  ;;  %v1510_v57 = vrot.slane %v1505_v63, %v1509_v35 }
 0x275   : > { %2515 = vmatprep.subr.msk.bf16.mxu1 %vm3304_vm2, %v2513_v24 }
 0x27c   : > { %2518 = vmatpush3.bf16.xpose.msk.msra.mxu1 %vm3304_vm2, %v2516_v22 }
 0x27d   : > { %2521 = vmatprep.subr.msk.bf16.mxu1 %vm3304_vm2, %v2519_v34 }
 0x284   : > { %2524 = vmatpush3.bf16.xpose.msk.msra.mxu1 %vm3304_vm2, %v2522_v9 }
 0x28b   : > { %2288 = vmatmul.mubr.msk.f32.vlgmr.msra.gmra.mrb[64].mxu1 %vm1050_vm1, %v3296_v20 }
 0x31e   : > { %v1772_v2 = vpop.f32.mrb[64].mxu0 }
 0x31f   : > { %v1773_v13 = vadd.f32 %v1772_v2, %v1510_v57  ;;  %v1774_v15 = vpop.f32.mrb[65].mxu0 }
 0x320   : > { %v1775_v16 = vadd.f32 %v1774_v15, %v1510_v57 }
 0x321   : > { %v1848_v17 = vsub.f32 0.0, %v1773_v13 }
 0x322   : > { %v1849_v56 = vsub.f32 0.0, %v1775_v16 }
 0x323   : > { %v1852_v29 = vmul.f32 1.442695, %v1848_v17 }
 0x324   : > { %v1854_v31 = vmul.f32 1.442695, %v1849_v56 }
 0x325   : > { %2861 = vpow2.f32 %v1852_v29 }
 0x326   : > { %2863 = vpow2.f32 %v1854_v31 }
 0x32f   : > { %v2862_v26 = vpop.eup %2861 }
 0x330   : > { %v2864_v25 = vpop.eup %2863 }
 0x331   : > { %v1864_v43 = vcombine.low %v2862_v26, %v2864_v25 }
 0x333   : > { %v1872_v55 = vrot.slane %v1864_v43, %v1871_v44 }
 0x35e   : > { %v1843_v20 = vpop.f32.mrb[64].mxu1 }
 0x35f   : > { %v1844_v45 = vadd.f32 %v1843_v20, %v1510_v57  ;;  %v1845_v9 = vpop.f32.mrb[65].mxu1 }
 0x360   : > { %v1846_v22 = vadd.f32 %v1845_v9, %v1510_v57 }
 0x361   : > { %v1850_v33 = vsub.f32 0.0, %v1844_v45 }
 0x362   : > { %v1851_v50 = vsub.f32 0.0, %v1846_v22 }
 0x363   : > { %v1856_v36 = vmul.f32 1.442695, %v1850_v33 }
 0x364   : > { %v1858_v37 = vmul.f32 1.442695, %v1851_v50 }
 0x365   : > { %2865 = vpow2.f32 %v1856_v36 }
 0x366   : > { %2867 = vpow2.f32 %v1858_v37 }
 0x36f   : > { %v2866_v47 = vpop.eup %2865 }
 0x370   : > { %v2868_v53 = vpop.eup %2867 }
 0x371   : > { %v1865_v54 = vcombine.low %v2866_v47, %v2868_v53 }
 0x373   : > { %v1879_v60 = vrot.slane %v1865_v54, %v1871_v44 }
 0x375   : > { %v1880_v6 = vcombine.low %v1872_v55, %v1879_v60 }
 0x377   : > { %v1887_v8 = vrot.slane %v1880_v6, %v1871_v44 }
 0x379   : > { %1893 = vst.msk [vmem:[%s274_s25] sm:$0xf] %vm1891_vm3, %v1887_v8 }
 0x37a   : > { %2882 = shalt.err (!%p2879_p3)
}
 0x37b   : > { %s2883_s16 = scalar_lea.hbm %s3529_s10, 64  ;;  %s2887_s22 = scalar_lea.hbm %s3578_s7, 128 }
 0x37c   : > { %p2884_p4 = scmp.ne.s32.totalorder %s3529_s10, %s2883_s16  ;;  %p2888_p9 = scmp.lt.u32.totalorder %s3529_s10, %s3578_s7 }
 0x37d   : > { %p2889_p10 = scmp.lt.u32.totalorder %s2887_s22, %s2883_s16  ;;  %p2891_p12 = scmp.lt.u32.totalorder %s2883_s16, %s3529_s10 }
 0x37e   : > { %p2885_p7 = pnand %p2884_p4, %p3014_p5 }
 0x37f   : > { %p2890_p11 = por %p2889_p10, %p2888_p9 }
 0x380   : > { %p2886_p8 = pneg %p2885_p7 }
 0x381   : > { %p2892_p13 = por %p2891_p12, %p2890_p11 }
 0x383   : > { %p2893_p0 = pnand %p2892_p13, %p2886_p8 }
 0x385   : > { %2896 = shalt.err (!%p2893_p0)
}
 0x386   : > { %2525 = dma.vmem_to_hbm [thread:$0]  (%p3014_p5), %s3531_s6, 64, %s3529_s10, %s1895_s14  }
 0x387 PF: > { %p2531_p1 = scmp.ge.s32.totalorder %s2931_s29, 2  ;;  %s1921_s25 = sand.u32 1, %s2919_s26  }
 0x388   : > { %s1922_s30 = scalar_lea.sflag [#allocation4], %s1921_s25 }
 0x389   : > { %p2528_p2 = pnand %p2531_p1, %p3018_p6 }
 0x38b   : > { %2914 = dma.done.wait (!%p2528_p2), %s1922_s30, 64  }
 0x38c   : > { %2916 = vsyncadd (!%p2528_p2), %s1922_s30, 4294967232  ;;  %p19_p3 = scmp.ge.s32.totalorder %s3002_s8, 4   ;;  %s3583_s26 = smov %s2923_s27 }
 0x38d   : > { %s3584_s27 = smov %s2927_s28  ;;  %s3585_s28 = smov %s3012_s11 }
 0x38e   : > { %s3586_s29 = smov %s3002_s8  ;;  %21 = sbr.rel (!%p19_p3) target bundleno = 6 (0x6), region = 83 }
 0x395   :  { %1927 = vsyncpa [#allocation4], 1 }
 0x396   :  { %1929 = vsyncpa [#allocation4 + $0x1], 1 }

</bundles_post_ra>
